<compile_context>
chip_gen: v7x
topology: tpu7x:2x2x1
jax: 0.10.0
libtpu: 0.0.40
codegen_flags: <defaults>
</compile_context>

<pallas_src>
import jax
import jax.numpy as jnp
from jax.experimental import pallas as pl
from jax.experimental.pallas import tpu as pltpu


_R_TILE_MAX = 512                     # rows (sublane axis) per step for large R
_L_TILE_MAX = 8192                    # lanes per reduction step (multiple of 128)
_TILE_BYTES_BUDGET = 4 * 1024 * 1024  # target size of one input tile


def _round_up(x, m):
    return (x + m - 1) // m * m


def _min_value(dtype):
    dtype = jnp.dtype(dtype)
    if jnp.issubdtype(dtype, jnp.floating):
        return float("-inf")
    if jnp.issubdtype(dtype, jnp.integer):
        return int(jnp.iinfo(dtype).min)
    raise ValueError(f"unsupported dtype for max pooling: {dtype}")


def _choose_tiles(R, L, itemsize):
    # Row tile: full R when it fits, else a 512-row tile (multiple of both 8
    # and 128, so the input sublane dim and a ragged last block are both legal).
    r_tile = R if R <= _R_TILE_MAX else _R_TILE_MAX
    r_rows = _round_up(r_tile, 8)          # sublane-padded rows (VMEM cost)
    # Lane tile: as wide as the per-tile VMEM budget allows (multiple of 128).
    max_lanes = (_TILE_BYTES_BUDGET // (r_rows * itemsize)) // 128 * 128
    max_lanes = max(128, min(max_lanes, _L_TILE_MAX))
    if L <= max_lanes:
        l_tile = L          # full reduction axis in one step; never ragged
    else:
        l_tile = max_lanes  # multiple of 128; last L block may be ragged
    return r_tile, l_tile


def _make_kernel(L, l_tile, min_val):
    ragged = (L % l_tile) != 0

    def kernel(x_ref, o_ref):
        # x_ref: (r_tile, l_tile) tile of rows x length
        # o_ref: (r_tile, 1)      running max, resident across the L grid axis
        k = pl.program_id(1)
        x = x_ref[...]
        if ragged:
            # Mask lanes past the true length so garbage in the ragged tail of
            # the last L block can never win the max.
            col = jax.lax.broadcasted_iota(jnp.int32, x.shape, 1)
            x = jnp.where(k * l_tile + col < L,
                          x, jnp.asarray(min_val, dtype=x.dtype))
        part = jnp.max(x, axis=-1, keepdims=True)   # (r_tile, 1)

        @pl.when(k == 0)
        def _init():
            o_ref[...] = part

        @pl.when(k > 0)
        def _accumulate():
            o_ref[...] = jnp.maximum(o_ref[...], part)

    return kernel


def global_max_pool1d(x):
    """x: (N, C, L) -> (N, C, 1), max over L. Dtype preserved."""
    N, C, L = x.shape
    dtype = x.dtype
    itemsize = jnp.dtype(dtype).itemsize

    R = N * C
    x2 = x.reshape(R, L)                       # free: contiguous merge of N, C

    r_tile, l_tile = _choose_tiles(R, L, itemsize)
    grid = (pl.cdiv(R, r_tile), pl.cdiv(L, l_tile))

    out = pl.pallas_call(
        _make_kernel(L, l_tile, _min_value(dtype)),
        out_shape=jax.ShapeDtypeStruct((R, 1), dtype),
        grid=grid,
        in_specs=[pl.BlockSpec((r_tile, l_tile), lambda r, k: (r, k))],
        out_specs=pl.BlockSpec((r_tile, 1), lambda r, k: (r, 0)),
        compiler_params=pltpu.CompilerParams(
            dimension_semantics=("parallel", "arbitrary"),
            vmem_limit_bytes=32 * 1024 * 1024,
        ),
        cost_estimate=pl.CostEstimate(
            flops=R * L,
            transcendentals=0,
            bytes_accessed=R * L * itemsize + R * itemsize,
        ),
    )(x2)

    # (R, 1) -> (N, C, 1): identical contiguous element order, pure reshape.
    return out.reshape(N, C, 1)


if __name__ == "__main__":
    key = jax.random.PRNGKey(0)

    # Small shape matching the module's expected (N, C, L) input.
    N, C, L = 2, 4, 16
    x = jax.random.normal(key, (N, C, L), dtype=jnp.float32)
    out = jax.block_until_ready(global_max_pool1d(x))
    ref = jnp.max(x, axis=2, keepdims=True)
    assert out.shape == (N, C, 1), out.shape
    assert out.dtype == x.dtype, out.dtype
    assert jnp.array_equal(out, ref), "mismatch vs reference (small case)"

    # Multi-step (tiled L) reduction with a ragged tail -> exercises the
    # in-kernel iota mask, and dtype preservation in bf16.
    x2 = jax.random.normal(jax.random.PRNGKey(1), (2, 8, 20000),
                           dtype=jnp.bfloat16)
    out2 = jax.block_until_ready(global_max_pool1d(x2))
    ref2 = jnp.max(x2, axis=2, keepdims=True)
    assert out2.dtype == x2.dtype
    assert jnp.array_equal(out2, ref2), "mismatch vs reference (tiled-L case)"

    # Tiled / ragged row axis (R = N*C > 512).
    x3 = jax.random.normal(jax.random.PRNGKey(2), (4, 200, 1000),
                           dtype=jnp.float32)
    out3 = jax.block_until_ready(global_max_pool1d(x3))
    ref3 = jnp.max(x3, axis=2, keepdims=True)
    assert jnp.array_equal(out3, ref3), "mismatch vs reference (tiled-R case)"

    print("KERNEL_OK")
</pallas_src>

<mosaic_0001>
module attributes {stable_mosaic.version = 11 : i64} {
  func.func @kernel(%arg0: i32, %arg1: i32, %arg2: memref<8x16xf32, #tpu.memory_space<vmem>>, %arg3: memref<8x1xf32, #tpu.memory_space<vmem>>) attributes {dimension_semantics = [#tpu.dimension_semantics<parallel>, #tpu.dimension_semantics<arbitrary>], iteration_bounds = array<i64: 1, 1>, scalar_prefetch = 0 : i64, scratch_operands = 0 : i64, tpu.core_type = #tpu.core_type<tc>, window_params = [{transform_indices = @transform_0, window_bounds = array<i64: 8, 16>}, {transform_indices = @transform_1, window_bounds = array<i64: 8, 1>}]} {
    %c0 = arith.constant 0 : index
    %c0_0 = arith.constant 0 : index
    %0 = vector.load %arg2[%c0, %c0_0] : memref<8x16xf32, #tpu.memory_space<vmem>>, vector<8x16xf32>
    %cst = arith.constant dense<0xFF800000> : vector<8xf32>
    %1 = vector.multi_reduction <maximumf>, %0, %cst [1] : vector<8x16xf32> to vector<8xf32>
    %2 = vector.shape_cast %1 : vector<8xf32> to vector<8x1xf32>
    %c0_i32 = arith.constant 0 : i32
    %3 = arith.cmpi eq, %arg1, %c0_i32 : i32
    %4 = arith.extui %3 : i1 to i32
    %c0_i32_1 = arith.constant 0 : i32
    %5 = arith.cmpi ne, %4, %c0_i32_1 : i32
    scf.if %5 {
      %c0_4 = arith.constant 0 : index
      %c0_5 = arith.constant 0 : index
      %9 = vector.load %arg3[%c0_4, %c0_5] : memref<8x1xf32, #tpu.memory_space<vmem>>, vector<8x1xf32>
      tpu.vector_store %arg3[%c0_4, %c0_5], %2 {strides = array<i32>} : memref<8x1xf32, #tpu.memory_space<vmem>>, vector<8x1xf32>,
    } else {
    }
    %c0_i32_2 = arith.constant 0 : i32
    %6 = arith.cmpi sgt, %arg1, %c0_i32_2 : i32
    %7 = arith.extui %6 : i1 to i32
    %c0_i32_3 = arith.constant 0 : i32
    %8 = arith.cmpi ne, %7, %c0_i32_3 : i32
    scf.if %8 {
      %c0_4 = arith.constant 0 : index
      %c0_5 = arith.constant 0 : index
      %9 = vector.load %arg3[%c0_4, %c0_5] : memref<8x1xf32, #tpu.memory_space<vmem>>, vector<8x1xf32>
      %10 = arith.maximumf %9, %2 : vector<8x1xf32>
      %c0_6 = arith.constant 0 : index
      %c0_7 = arith.constant 0 : index
      %11 = vector.load %arg3[%c0_6, %c0_7] : memref<8x1xf32, #tpu.memory_space<vmem>>, vector<8x1xf32>
      tpu.vector_store %arg3[%c0_6, %c0_7], %10 {strides = array<i32>} : memref<8x1xf32, #tpu.memory_space<vmem>>, vector<8x1xf32>,
    } else {
    }
    return
  }
  func.func @transform_0(%arg0: i32, %arg1: i32) -> (i32, i32) {
    %c0_i32 = arith.constant 0 : i32
    return %arg0, %arg1 : i32, i32
  }
  func.func @transform_1(%arg0: i32, %arg1: i32) -> (i32, i32) {
    %c0_i32 = arith.constant 0 : i32
    %c0_i32_0 = arith.constant 0 : i32
    return %arg0, %c0_i32 : i32, i32
  }
}

</mosaic_0001>

<bundles_post_ra>
// kernel: tpu_custom_call.1
= control target key start
LH: loop header
LB: loop body
LE: loop exit
PB: predicated region body
PF: predicated region fallthrough
CT: control target
= control target key end

     0   :  { %6 = vsyncpa [#allocation3], 0  ;;  %s69_s6 = smov [#allocation2]   ;;  %s95_s0 = inlined_call_operand.hbm [shape: f32[8,16], index: 0, kind: input, shape index: {}]   ;;  %s96_s1 = inlined_call_operand.vmem [shape: f32[8,1], index: 1, kind: output, shape index: {}]  }
   0x1   :  { %s13_s7 = sshll.u32 %s69_s6, 4  ;;  %s45_s10 = scalar_lea.hbm %s95_s0, 128  ;;  %s14_s7 = int_to_ptr.vmem [resolvable:$true] %s13_s7 }
   0x2   :  { %p46_p0 = scmp.ne.s32.totalorder %s95_s0, %s45_s10  ;;  %p49_p1 = scmp.lt.u32.totalorder %s45_s10, %s95_s0 }
   0x4   :  { %p51_p2 = pnand %p49_p1, %p46_p0 }
   0x6   :  { %54 = shalt.err (!%p51_p2)
}
   0x7   :  { %s55_s15 = scalar_lea.vmem %s14_s7, 128  ;;  %p60_p4 = scmp.lt.s32.totalorder %s14_s7, %s14_s7 }
   0x8   :  { %p56_p3 = scmp.ne.s32.totalorder %s14_s7, %s55_s15  ;;  %p61_p5 = scmp.lt.s32.totalorder %s55_s15, %s55_s15 }
   0xa   :  { %p62_p6 = por %p61_p5, %p60_p4 }
   0xc   :  { %p63_p7 = pnand %p62_p6, %p56_p3 }
   0xe   :  { %66 = shalt.err (!%p63_p7)
}
   0xf   :  { %16 = dma.hbm_to_vmem [thread:$0]  %s95_s0, 128, %s14_s7, [#allocation3]  }
  0x10   :  { %67 = dma.done.wait [#allocation3], 128  }
  0x11   :  { %68 = vsyncadd [#allocation3], 4294967168  ;;  %vm21_vm0 = vcmask 130048   ;;  %v20_v0 = vld [vmem:[#allocation2] sm:$0xff]  ;;  %vm29_vm1 = vcmask 7168  }
  0x12   :  { %v22_v1 = vsel %vm21_vm0, %v20_v0, -inf }
  0x13   :  { %23 = vmax.xlane.f32.xlu0 %v22_v1 }
  0xa0   :  { %v24_v2 = vpop.xlane.xlu0 %23 }
  0xa1   :  { %30 = vst.msk [vmem:[%s96_s1] sm:$0xff] %vm29_vm1, %v24_v2 }
  0xa2   :  { %43 = vsyncpa [#allocation3], 1 }

</bundles_post_ra>
